<compile_context>
chip_gen: v5e
topology: v5e:2x2
jax: 0.10.0
libtpu: 0.0.40
codegen_flags: <defaults>
</compile_context>

<pallas_src>
import jax
import jax.numpy as jnp
from jax.experimental import pallas as pl
from jax.experimental.pallas import tpu as pltpu

BN_EPS = 1e-5


# ----------------------------- fused kernel ---------------------------------


def _fused_mlp_kernel(x_ref,
                      w1_ref, s1_ref, t1_ref,
                      w2_ref, s2_ref, t2_ref,
                      w3_ref, s3_ref, t3_ref,
                      w4_ref, b4_ref,
                      o_ref):
    """Whole MLP on one batch tile, everything resident in VMEM.

    x_ref:               (TB, K0)   input activations tile
    w{i}_ref:            (K_{i-1}, N_i)  full weight matrices
    s{i}_ref, t{i}_ref:  (1, N_i)   folded BN scale / shift (bias+BN fused)
    w4_ref, b4_ref:      final classifier, lane-padded to a multiple of 128
    o_ref:               (TB, N_pad) padded logits tile
    """
    def hidden(h, w_ref, s_ref, t_ref):
        y = jnp.dot(h, w_ref[...], preferred_element_type=jnp.float32)
        # Folded Linear-bias + BatchNorm (running stats) + ReLU.
        # TODO(synk): Dropout is identity in eval mode; training-mode dropout
        # (pltpu.prng_random_bits mask) intentionally omitted.
        return jnp.maximum(y * s_ref[...] + t_ref[...], 0.0)

    h = x_ref[...]
    h = hidden(h, w1_ref, s1_ref, t1_ref)
    h = hidden(h, w2_ref, s2_ref, t2_ref)
    h = hidden(h, w3_ref, s3_ref, t3_ref)
    logits = jnp.dot(h, w4_ref[...],
                     preferred_element_type=jnp.float32) + b4_ref[...]
    o_ref[...] = logits.astype(o_ref.dtype)


def enhanced_bird_dnn_forward(prepared, x, num_classes):
    """Run the fused MLP. `prepared` comes from prepare_inference_params()."""
    (w1, s1, t1), (w2, s2, t2), (w3, s3, t3), (w4p, b4p) = prepared
    B, K = x.shape
    n_pad = w4p.shape[1]

    # Batch tiling: single resident block for small batches; for large batches
    # tile the batch axis and mark it "parallel" (shards across v7x's 2 TCs).
    tb = 256 if (B >= 512 and B % 256 == 0) else B
    grid = (B // tb,)

    def full_spec(a):
        return pl.BlockSpec(a.shape, lambda i: (0, 0))

    out_padded = pl.pallas_call(
        _fused_mlp_kernel,
        out_shape=jax.ShapeDtypeStruct((B, n_pad), x.dtype),
        grid_spec=pltpu.PrefetchScalarGridSpec(
            num_scalar_prefetch=0,
            grid=grid,
            in_specs=[
                pl.BlockSpec((tb, K), lambda i: (i, 0)),   # x batch tile
                full_spec(w1), full_spec(s1), full_spec(t1),
                full_spec(w2), full_spec(s2), full_spec(t2),
                full_spec(w3), full_spec(s3), full_spec(t3),
                full_spec(w4p), full_spec(b4p),
            ],
            out_specs=pl.BlockSpec((tb, n_pad), lambda i: (i, 0)),
        ),
        compiler_params=pltpu.CompilerParams(
            dimension_semantics=("parallel",)),
    )(x, w1, s1, t1, w2, s2, t2, w3, s3, t3, w4p, b4p)

    return out_padded[:, :num_classes]


# ---------------- parameter construction (deterministic, in-script) ----------


def init_linear(key, in_dim, out_dim, dtype=jnp.float32):
    # Mirrors torch.nn.Linear default init: U(-1/sqrt(in), 1/sqrt(in)).
    kw, kb = jax.random.split(key)
    bound = 1.0 / jnp.sqrt(jnp.array(in_dim, dtype))
    w = jax.random.uniform(kw, (in_dim, out_dim), dtype, -bound, bound)
    b = jax.random.uniform(kb, (1, out_dim), dtype, -bound, bound)
    return w, b


def init_bn(key, dim, dtype=jnp.float32):
    # PyTorch defaults are gamma=1, beta=0, mean=0, var=1; perturb them
    # deterministically so the BN path is actually exercised.
    k1, k2, k3, k4 = jax.random.split(key, 4)
    gamma = 1.0 + 0.1 * jax.random.normal(k1, (1, dim), dtype)
    beta = 0.1 * jax.random.normal(k2, (1, dim), dtype)
    mean = 0.1 * jax.random.normal(k3, (1, dim), dtype)
    var = 1.0 + 0.1 * jax.random.uniform(k4, (1, dim), dtype)
    return gamma, beta, mean, var


def build_params(key, input_dim, num_classes, hidden_layers):
    dims = [input_dim] + list(hidden_layers)
    params = []
    for i in range(len(hidden_layers)):
        key, k_lin, k_bn = jax.random.split(key, 3)
        w, b = init_linear(k_lin, dims[i], dims[i + 1])
        gamma, beta, mean, var = init_bn(k_bn, dims[i + 1])
        params.append(dict(w=w, b=b, gamma=gamma, beta=beta, mean=mean, var=var))
    key, k_out = jax.random.split(key)
    w, b = init_linear(k_out, hidden_layers[-1], num_classes)
    params.append(dict(w=w, b=b))
    return params


def prepare_inference_params(params):
    """Fold bias + BatchNorm(running stats) into per-feature (scale, shift)
    and lane-pad the final classifier to a multiple of 128 columns.
    Done once, outside the kernel."""
    prepared = []
    for layer in params[:-1]:
        inv_std = 1.0 / jnp.sqrt(layer["var"] + BN_EPS)
        scale = layer["gamma"] * inv_std                              # (1, N)
        shift = (layer["b"] - layer["mean"]) * scale + layer["beta"]  # (1, N)
        prepared.append((layer["w"], scale, shift))

    last = params[-1]
    w, b = last["w"], last["b"]
    n = w.shape[1]
    n_pad = max(128, int(pl.cdiv(n, 128)) * 128)
    w_pad = jnp.pad(w, ((0, 0), (0, n_pad - n)))
    b_pad = jnp.pad(b, ((0, 0), (0, n_pad - n)))
    prepared.append((w_pad, b_pad))
    # TODO(synk): for large batches on v6e/v7x, cast weights/activations to
    # bf16 (f32 accumulation) to halve VMEM traffic; kept f32 at these shapes.
    return prepared


# ---------------- reference (pure JAX) for a quick sanity check --------------


def reference_forward(params, x):
    h = x
    for layer in params[:-1]:
        y = h @ layer["w"] + layer["b"]
        y = (y - layer["mean"]) / jnp.sqrt(layer["var"] + BN_EPS)
        y = y * layer["gamma"] + layer["beta"]
        h = jnp.maximum(y, 0.0)
    return h @ params[-1]["w"] + params[-1]["b"]


if __name__ == "__main__":
    # Small shapes consistent with the module's forward:
    #   batch=8, input_dim=32, hidden_layers=[256, 128, 128], num_classes=10
    B, INPUT_DIM, NUM_CLASSES = 8, 32, 10
    HIDDEN = [256, 128, 128]

    key = jax.random.PRNGKey(0)
    key, k_x, k_p = jax.random.split(key, 3)
    x = jax.random.normal(k_x, (B, INPUT_DIM), jnp.float32)
    params = build_params(k_p, INPUT_DIM, NUM_CLASSES, HIDDEN)
    prepared = prepare_inference_params(params)

    logits = enhanced_bird_dnn_forward(prepared, x, NUM_CLASSES)
    logits = jax.block_until_ready(logits)

    ref = reference_forward(params, x)
    assert logits.shape == (B, NUM_CLASSES)
    assert jnp.allclose(logits, ref, atol=1e-4, rtol=1e-4), (
        float(jnp.max(jnp.abs(logits - ref))))

    print("KERNEL_OK")
</pallas_src>

<mosaic_0001>
module attributes {stable_mosaic.version = 11 : i64} {
  func.func @_fused_mlp_kernel(%arg0: i32, %arg1: memref<8x32xf32, #tpu.memory_space<vmem>>, %arg2: memref<32x256xf32, #tpu.memory_space<vmem>>, %arg3: memref<1x256xf32, #tpu.memory_space<vmem>>, %arg4: memref<1x256xf32, #tpu.memory_space<vmem>>, %arg5: memref<256x128xf32, #tpu.memory_space<vmem>>, %arg6: memref<1x128xf32, #tpu.memory_space<vmem>>, %arg7: memref<1x128xf32, #tpu.memory_space<vmem>>, %arg8: memref<128x128xf32, #tpu.memory_space<vmem>>, %arg9: memref<1x128xf32, #tpu.memory_space<vmem>>, %arg10: memref<1x128xf32, #tpu.memory_space<vmem>>, %arg11: memref<128x128xf32, #tpu.memory_space<vmem>>, %arg12: memref<1x128xf32, #tpu.memory_space<vmem>>, %arg13: memref<8x128xf32, #tpu.memory_space<vmem>>) attributes {dimension_semantics = [#tpu.dimension_semantics<parallel>], iteration_bounds = array<i64: 1>, scalar_prefetch = 0 : i64, scratch_operands = 0 : i64, tpu.core_type = #tpu.core_type<tc>, window_params = [{transform_indices = @transform_0, window_bounds = array<i64: 8, 32>}, {pipeline_mode = #tpu.pipeline_mode<synchronous>, transform_indices = @transform_1, window_bounds = array<i64: 32, 256>}, {pipeline_mode = #tpu.pipeline_mode<synchronous>, transform_indices = @transform_2, window_bounds = array<i64: 1, 256>}, {pipeline_mode = #tpu.pipeline_mode<synchronous>, transform_indices = @transform_3, window_bounds = array<i64: 1, 256>}, {pipeline_mode = #tpu.pipeline_mode<synchronous>, transform_indices = @transform_4, window_bounds = array<i64: 256, 128>}, {pipeline_mode = #tpu.pipeline_mode<synchronous>, transform_indices = @transform_5, window_bounds = array<i64: 1, 128>}, {pipeline_mode = #tpu.pipeline_mode<synchronous>, transform_indices = @transform_6, window_bounds = array<i64: 1, 128>}, {pipeline_mode = #tpu.pipeline_mode<synchronous>, transform_indices = @transform_7, window_bounds = array<i64: 128, 128>}, {pipeline_mode = #tpu.pipeline_mode<synchronous>, transform_indices = @transform_8, window_bounds = array<i64: 1, 128>}, {pipeline_mode = #tpu.pipeline_mode<synchronous>, transform_indices = @transform_9, window_bounds = array<i64: 1, 128>}, {pipeline_mode = #tpu.pipeline_mode<synchronous>, transform_indices = @transform_10, window_bounds = array<i64: 128, 128>}, {pipeline_mode = #tpu.pipeline_mode<synchronous>, transform_indices = @transform_11, window_bounds = array<i64: 1, 128>}, {transform_indices = @transform_12, window_bounds = array<i64: 8, 128>}]} {
    %c0 = arith.constant 0 : index
    %c0_0 = arith.constant 0 : index
    %0 = vector.load %arg1[%c0, %c0_0] : memref<8x32xf32, #tpu.memory_space<vmem>>, vector<8x32xf32>
    %c0_1 = arith.constant 0 : index
    %c0_2 = arith.constant 0 : index
    %1 = vector.load %arg2[%c0_1, %c0_2] : memref<32x256xf32, #tpu.memory_space<vmem>>, vector<32x256xf32>
    %cst = arith.constant dense<0.000000e+00> : vector<8x256xf32>
    %2 = tpu.matmul %0, %1, %cst {dimension_numbers = #tpu.dot_dimension_numbers<[1], [0], [0], [1], [0, 0, 1, 1], [], []>} : vector<8x32xf32>, vector<32x256xf32>, vector<8x256xf32> -> vector<8x256xf32>
    %c0_3 = arith.constant 0 : index
    %c0_4 = arith.constant 0 : index
    %3 = vector.load %arg3[%c0_3, %c0_4] : memref<1x256xf32, #tpu.memory_space<vmem>>, vector<1x256xf32>
    %4 = vector.broadcast %3 : vector<1x256xf32> to vector<8x256xf32>
    %5 = arith.mulf %2, %4 : vector<8x256xf32>
    %c0_5 = arith.constant 0 : index
    %c0_6 = arith.constant 0 : index
    %6 = vector.load %arg4[%c0_5, %c0_6] : memref<1x256xf32, #tpu.memory_space<vmem>>, vector<1x256xf32>
    %7 = vector.broadcast %6 : vector<1x256xf32> to vector<8x256xf32>
    %8 = arith.addf %5, %7 : vector<8x256xf32>
    %cst_7 = arith.constant 0.000000e+00 : f32
    %9 = vector.broadcast %cst_7 : f32 to vector<8x256xf32>
    %10 = arith.maximumf %8, %9 : vector<8x256xf32>
    %c0_8 = arith.constant 0 : index
    %c0_9 = arith.constant 0 : index
    %11 = vector.load %arg5[%c0_8, %c0_9] : memref<256x128xf32, #tpu.memory_space<vmem>>, vector<256x128xf32>
    %cst_10 = arith.constant dense<0.000000e+00> : vector<8x128xf32>
    %12 = tpu.matmul %10, %11, %cst_10 {dimension_numbers = #tpu.dot_dimension_numbers<[1], [0], [0], [1], [0, 0, 1, 1], [], []>} : vector<8x256xf32>, vector<256x128xf32>, vector<8x128xf32> -> vector<8x128xf32>
    %c0_11 = arith.constant 0 : index
    %c0_12 = arith.constant 0 : index
    %13 = vector.load %arg6[%c0_11, %c0_12] : memref<1x128xf32, #tpu.memory_space<vmem>>, vector<1x128xf32>
    %14 = vector.broadcast %13 : vector<1x128xf32> to vector<8x128xf32>
    %15 = arith.mulf %12, %14 : vector<8x128xf32>
    %c0_13 = arith.constant 0 : index
    %c0_14 = arith.constant 0 : index
    %16 = vector.load %arg7[%c0_13, %c0_14] : memref<1x128xf32, #tpu.memory_space<vmem>>, vector<1x128xf32>
    %17 = vector.broadcast %16 : vector<1x128xf32> to vector<8x128xf32>
    %18 = arith.addf %15, %17 : vector<8x128xf32>
    %cst_15 = arith.constant 0.000000e+00 : f32
    %19 = vector.broadcast %cst_15 : f32 to vector<8x128xf32>
    %20 = arith.maximumf %18, %19 : vector<8x128xf32>
    %c0_16 = arith.constant 0 : index
    %c0_17 = arith.constant 0 : index
    %21 = vector.load %arg8[%c0_16, %c0_17] : memref<128x128xf32, #tpu.memory_space<vmem>>, vector<128x128xf32>
    %cst_18 = arith.constant dense<0.000000e+00> : vector<8x128xf32>
    %22 = tpu.matmul %20, %21, %cst_18 {dimension_numbers = #tpu.dot_dimension_numbers<[1], [0], [0], [1], [0, 0, 1, 1], [], []>} : vector<8x128xf32>, vector<128x128xf32>, vector<8x128xf32> -> vector<8x128xf32>
    %c0_19 = arith.constant 0 : index
    %c0_20 = arith.constant 0 : index
    %23 = vector.load %arg9[%c0_19, %c0_20] : memref<1x128xf32, #tpu.memory_space<vmem>>, vector<1x128xf32>
    %24 = vector.broadcast %23 : vector<1x128xf32> to vector<8x128xf32>
    %25 = arith.mulf %22, %24 : vector<8x128xf32>
    %c0_21 = arith.constant 0 : index
    %c0_22 = arith.constant 0 : index
    %26 = vector.load %arg10[%c0_21, %c0_22] : memref<1x128xf32, #tpu.memory_space<vmem>>, vector<1x128xf32>
    %27 = vector.broadcast %26 : vector<1x128xf32> to vector<8x128xf32>
    %28 = arith.addf %25, %27 : vector<8x128xf32>
    %cst_23 = arith.constant 0.000000e+00 : f32
    %29 = vector.broadcast %cst_23 : f32 to vector<8x128xf32>
    %30 = arith.maximumf %28, %29 : vector<8x128xf32>
    %c0_24 = arith.constant 0 : index
    %c0_25 = arith.constant 0 : index
    %31 = vector.load %arg11[%c0_24, %c0_25] : memref<128x128xf32, #tpu.memory_space<vmem>>, vector<128x128xf32>
    %cst_26 = arith.constant dense<0.000000e+00> : vector<8x128xf32>
    %32 = tpu.matmul %30, %31, %cst_26 {dimension_numbers = #tpu.dot_dimension_numbers<[1], [0], [0], [1], [0, 0, 1, 1], [], []>} : vector<8x128xf32>, vector<128x128xf32>, vector<8x128xf32> -> vector<8x128xf32>
    %c0_27 = arith.constant 0 : index
    %c0_28 = arith.constant 0 : index
    %33 = vector.load %arg12[%c0_27, %c0_28] : memref<1x128xf32, #tpu.memory_space<vmem>>, vector<1x128xf32>
    %34 = vector.broadcast %33 : vector<1x128xf32> to vector<8x128xf32>
    %35 = arith.addf %32, %34 : vector<8x128xf32>
    %c0_29 = arith.constant 0 : index
    %c0_30 = arith.constant 0 : index
    %36 = vector.load %arg13[%c0_29, %c0_30] : memref<8x128xf32, #tpu.memory_space<vmem>>, vector<8x128xf32>
    tpu.vector_store %arg13[%c0_29, %c0_30], %35 {strides = array<i32>} : memref<8x128xf32, #tpu.memory_space<vmem>>, vector<8x128xf32>,
    return
  }
  func.func @transform_0(%arg0: i32) -> (i32, i32) {
    %c0_i32 = arith.constant 0 : i32
    %c0_i32_0 = arith.constant 0 : i32
    return %arg0, %c0_i32 : i32, i32
  }
  func.func @transform_1(%arg0: i32) -> (i32, i32) {
    %c0_i32 = arith.constant 0 : i32
    %c0_i32_0 = arith.constant 0 : i32
    %c0_i32_1 = arith.constant 0 : i32
    return %c0_i32, %c0_i32_0 : i32, i32
  }
  func.func @transform_2(%arg0: i32) -> (i32, i32) {
    %c0_i32 = arith.constant 0 : i32
    %c0_i32_0 = arith.constant 0 : i32
    %c0_i32_1 = arith.constant 0 : i32
    return %c0_i32, %c0_i32_0 : i32, i32
  }
  func.func @transform_3(%arg0: i32) -> (i32, i32) {
    %c0_i32 = arith.constant 0 : i32
    %c0_i32_0 = arith.constant 0 : i32
    %c0_i32_1 = arith.constant 0 : i32
    return %c0_i32, %c0_i32_0 : i32, i32
  }
  func.func @transform_4(%arg0: i32) -> (i32, i32) {
    %c0_i32 = arith.constant 0 : i32
    %c0_i32_0 = arith.constant 0 : i32
    %c0_i32_1 = arith.constant 0 : i32
    return %c0_i32, %c0_i32_0 : i32, i32
  }
  func.func @transform_5(%arg0: i32) -> (i32, i32) {
    %c0_i32 = arith.constant 0 : i32
    %c0_i32_0 = arith.constant 0 : i32
    %c0_i32_1 = arith.constant 0 : i32
    return %c0_i32, %c0_i32_0 : i32, i32
  }
  func.func @transform_6(%arg0: i32) -> (i32, i32) {
    %c0_i32 = arith.constant 0 : i32
    %c0_i32_0 = arith.constant 0 : i32
    %c0_i32_1 = arith.constant 0 : i32
    return %c0_i32, %c0_i32_0 : i32, i32
  }
  func.func @transform_7(%arg0: i32) -> (i32, i32) {
    %c0_i32 = arith.constant 0 : i32
    %c0_i32_0 = arith.constant 0 : i32
    %c0_i32_1 = arith.constant 0 : i32
    return %c0_i32, %c0_i32_0 : i32, i32
  }
  func.func @transform_8(%arg0: i32) -> (i32, i32) {
    %c0_i32 = arith.constant 0 : i32
    %c0_i32_0 = arith.constant 0 : i32
    %c0_i32_1 = arith.constant 0 : i32
    return %c0_i32, %c0_i32_0 : i32, i32
  }
  func.func @transform_9(%arg0: i32) -> (i32, i32) {
    %c0_i32 = arith.constant 0 : i32
    %c0_i32_0 = arith.constant 0 : i32
    %c0_i32_1 = arith.constant 0 : i32
    return %c0_i32, %c0_i32_0 : i32, i32
  }
  func.func @transform_10(%arg0: i32) -> (i32, i32) {
    %c0_i32 = arith.constant 0 : i32
    %c0_i32_0 = arith.constant 0 : i32
    %c0_i32_1 = arith.constant 0 : i32
    return %c0_i32, %c0_i32_0 : i32, i32
  }
  func.func @transform_11(%arg0: i32) -> (i32, i32) {
    %c0_i32 = arith.constant 0 : i32
    %c0_i32_0 = arith.constant 0 : i32
    %c0_i32_1 = arith.constant 0 : i32
    return %c0_i32, %c0_i32_0 : i32, i32
  }
  func.func @transform_12(%arg0: i32) -> (i32, i32) {
    %c0_i32 = arith.constant 0 : i32
    %c0_i32_0 = arith.constant 0 : i32
    return %arg0, %c0_i32 : i32, i32
  }
}

</mosaic_0001>

<bundles_post_ra>
// kernel: tpu_custom_call.1
= control target key start
LH: loop header
LB: loop body
LE: loop exit
PB: predicated region body
PF: predicated region fallthrough
CT: control target
= control target key end

     0   :  { %17 = vsyncpa [#allocation3], 0  ;;  %s705_s0 = inlined_call_operand.hbm [shape: f32[8,32], index: 0, kind: input, shape index: {}]   ;;  %s706_s1 = inlined_call_operand.hbm [shape: f32[32,256], index: 1, kind: input, shape index: {}]   ;;  %s707_s2 = inlined_call_operand.hbm [shape: f32[1,256], index: 2, kind: input, shape index: {}]   ;;  %s708_s3 = inlined_call_operand.vmem [shape: f32[1,256], index: 3, kind: input, shape index: {}]   ;;  %s709_s4 = inlined_call_operand.hbm [shape: f32[256,128], index: 4, kind: input, shape index: {}]   ;;  %s710_s5 = inlined_call_operand.vmem [shape: f32[1,128], index: 5, kind: input, shape index: {}]   ;;  %s711_s6 = inlined_call_operand.vmem [shape: f32[1,128], index: 6, kind: input, shape index: {}]   ;;  %s712_s7 = inlined_call_operand.hbm [shape: f32[128,128], index: 7, kind: input, shape index: {}]   ;;  %s713_s8 = inlined_call_operand.vmem [shape: f32[1,128], index: 8, kind: input, shape index: {}]   ;;  %s714_s9 = inlined_call_operand.vmem [shape: f32[1,128], index: 9, kind: input, shape index: {}]   ;;  %s715_s10 = inlined_call_operand.hbm [shape: f32[128,128], index: 10, kind: input, shape index: {}]   ;;  %s716_s11 = inlined_call_operand.vmem [shape: f32[1,128], index: 11, kind: input, shape index: {}]   ;;  %s717_s12 = inlined_call_operand.hbm [shape: f32[8,128], index: 12, kind: output, shape index: {}]  }
   0x1   :  { %18 = vsyncpa [#allocation6], 0 }
   0x2   :  { %19 = vsyncpa [#allocation9], 0 }
   0x3   :  { %20 = vsyncpa [#allocation12], 0  ;;  %s37_s23 = sshll.u32 %s706_s1, 4  ;;  %s38_s23 = int_to_ptr.hbm [resolvable:$true] %s37_s23 }
   0x4   :  { %21 = vsyncpa [#allocation4], 0  ;;  %s590_s24 = smov [#allocation5]   ;;  %s63_s28 = sshll.u32 %s709_s4, 4  ;;  %s64_s28 = int_to_ptr.hbm [resolvable:$true] %s63_s28 }
   0x5   :  { %s39_s25 = sshll.u32 %s590_s24, 4  ;;  %s591_s29 = smov 256   ;;  %s40_s25 = int_to_ptr.vmem [resolvable:$true] %s39_s25 }
   0x6   :  { %s592_s30 = smov 16   ;;  %s593_s13 = smov [#allocation8]  }
   0x7   :  { %45 = dma.hbm_to_vmem [thread:$0]  %s38_s23, 1024, %s40_s25, [#allocation6], %s591_s29, %s591_s29, %s592_s30  }
   0x8   :  { %s65_s14 = sshll.u32 %s593_s13, 4  ;;  %s594_s15 = smov 128   ;;  %s66_s14 = int_to_ptr.vmem [resolvable:$true] %s65_s14 }
   0x9   :  { %s595_s16 = smov 8   ;;  %s27_s18 = sshll.u32 %s705_s0, 4  ;;  %s28_s18 = int_to_ptr.hbm [resolvable:$true] %s27_s18 }
   0xa   :  { %71 = dma.hbm_to_vmem [thread:$0]  %s64_s28, 4096, %s66_s14, [#allocation9], %s594_s15, %s594_s15, %s595_s16  }
   0xb   :  { %s596_s19 = smov [#allocation2]   ;;  %s51_s22 = sshll.u32 %s707_s2, 4  ;;  %s52_s22 = int_to_ptr.hbm [resolvable:$true] %s51_s22 }
   0xc   :  { %s29_s20 = sshll.u32 %s596_s19, 4  ;;  %s597_s23 = smov [#allocation7]   ;;  %s30_s20 = int_to_ptr.vmem [resolvable:$true] %s29_s20 }
   0xd   :  { %32 = dma.hbm_to_vmem [thread:$0]  %s28_s18, 128, %s30_s20, [#allocation3]  }
   0xe   :  { %s53_s24 = sshll.u32 %s597_s23, 4  ;;  %s80_s27 = sshll.u32 %s712_s7, 4  ;;  %s54_s24 = int_to_ptr.vmem [resolvable:$true] %s53_s24  ;;  %s81_s27 = int_to_ptr.hbm [resolvable:$true] %s80_s27 }
   0xf   :  { %56 = dma.hbm_to_vmem [thread:$0]  %s52_s22, 32, %s54_s24, [#allocation6]  }
  0x10   :  { %s97_s29 = sshll.u32 %s715_s10, 4  ;;  %s598_s30 = smov [#allocation10]   ;;  %s98_s29 = int_to_ptr.hbm [resolvable:$true] %s97_s29 }
  0x11   :  { %s82_s13 = sshll.u32 %s598_s30, 4  ;;  %s599_s2 = smov [#allocation11]   ;;  %s83_s13 = int_to_ptr.vmem [resolvable:$true] %s82_s13 }
  0x12   :  { %88 = dma.hbm_to_vmem [thread:$0]  %s81_s27, 2048, %s83_s13, [#allocation9], %s594_s15, %s594_s15, %s595_s16  }
  0x13   :  { %s99_s14 = sshll.u32 %s599_s2, 4  ;;  %s100_s14 = int_to_ptr.vmem [resolvable:$true] %s99_s14 }
  0x14   :  { %105 = dma.hbm_to_vmem [thread:$0]  %s98_s29, 2048, %s100_s14, [#allocation12], %s594_s15, %s594_s15, %s595_s16  }
  0x15   :  { %580 = dma.done.wait [#allocation3], 128  }
  0x16   :  { %581 = vsyncadd [#allocation3], 4294967168 }
  0x17   :  { %582 = dma.done.wait [#allocation6], 1056  }
  0x18   :  { %583 = vsyncadd [#allocation6], 4294966240 }
  0x19   :  { %584 = dma.done.wait [#allocation9], 6144  }
  0x1a   :  { %585 = vsyncadd [#allocation9], 4294961152 }
  0x1b   :  { %586 = dma.done.wait [#allocation12], 2048  }
  0x1c   :  { %587 = vsyncadd [#allocation12], 4294965248  ;;  %v139_v0 = vld [vmem:[#allocation5 + $0x30] sm:$0xff]  ;;  %v140_v1 = vld [vmem:[#allocation5 + $0x38] sm:$0xff]  ;;  %vm141_vm0 = vcmask 261120   ;;  %s600_s21 = smov [#allocation13]  }
  0x1d   :  { %v137_v2 = vld [vmem:[#allocation5 + $0x20] sm:$0xff]  ;;  %157 = vmatpush.msra.mxu0 %v139_v0  ;;  %177 = vmatpush.msra.mxu1 %v140_v1  ;;  %v138_v3 = vld [vmem:[#allocation5 + $0x28] sm:$0xff]  ;;  %v135_v4 = vld [vmem:[#allocation5 + $0x10] sm:$0xff]  ;;  %s379_s4 = sshll.u32 %s600_s21, 4  ;;  %s381_s24 = sshll.u32 %s717_s12, 4  ;;  %s380_s4 = int_to_ptr.vmem [resolvable:$true] %s379_s4  ;;  %s382_s24 = int_to_ptr.hbm [resolvable:$true] %s381_s24 }
  0x1e   :  { %v136_v5 = vld [vmem:[#allocation5 + $0x18] sm:$0xff]  ;;  %v133_v9 = vld [vmem:[#allocation5] sm:$0xff]  ;;  %v134_v10 = vld [vmem:[#allocation5 + $0x8] sm:$0xff] }
  0x1f   :  { %158 = vmatpush.msra.mxu0 %v137_v2  ;;  %178 = vmatpush.msra.mxu1 %v138_v3  ;;  %v218_v6 = vld [vmem:[#allocation8 + $0x78] sm:$0xff]  ;;  %v217_v8 = vld [vmem:[#allocation8 + $0x70] sm:$0xff]  ;;  %v216_v13 = vld [vmem:[#allocation8 + $0x68] sm:$0xff] }
  0x20   :  { %v234_v7 = vld [vmem:[#allocation8 + $0xf8] sm:$0xff]  ;;  %235 = vmatpush.msra.mxu2 %v218_v6  ;;  %v233_v11 = vld [vmem:[#allocation8 + $0xf0] sm:$0xff]  ;;  %v232_v14 = vld [vmem:[#allocation8 + $0xe8] sm:$0xff] }
  0x21   :  { %255 = vmatpush.msra.mxu3 %v234_v7  ;;  %159 = vmatpush.msra.mxu0 %v135_v4  ;;  %v132_v12 = vld [vmem:[#allocation2] sm:$0xff]  ;;  %v215_v15 = vld [vmem:[#allocation8 + $0x60] sm:$0xff]  ;;  %v212_v21 = vld [vmem:[#allocation8 + $0x48] sm:$0xff] }
  0x22   :  { %179 = vmatpush.msra.mxu1 %v136_v5  ;;  %236 = vmatpush.msra.mxu2 %v217_v8  ;;  %v231_v16 = vld [vmem:[#allocation8 + $0xe0] sm:$0xff]  ;;  %v214_v17 = vld [vmem:[#allocation8 + $0x58] sm:$0xff]  ;;  %v213_v19 = vld [vmem:[#allocation8 + $0x50] sm:$0xff] }
  0x23   :  { %256 = vmatpush.msra.mxu3 %v233_v11  ;;  %160 = vmatpush.msra.mxu0 %v133_v9  ;;  %v230_v18 = vld [vmem:[#allocation8 + $0xd8] sm:$0xff]  ;;  %v229_v20 = vld [vmem:[#allocation8 + $0xd0] sm:$0xff]  ;;  %v228_v22 = vld [vmem:[#allocation8 + $0xc8] sm:$0xff] }
  0x24   :  { %180 = vmatpush.msra.mxu1 %v134_v10  ;;  %394 = vmatmul.msk.f32.vlgmr.msra.gmra.mxu0 %vm141_vm0, %v132_v12  ;;  %v211_v23 = vld [vmem:[#allocation8 + $0x40] sm:$0xff]  ;;  %v210_v25 = vld [vmem:[#allocation8 + $0x38] sm:$0xff]  ;;  %v209_v27 = vld [vmem:[#allocation8 + $0x30] sm:$0xff] }
  0x25   :  { %395 = vmatmul.msk.f32.vlgmr.msra.gmra.mxu1 %vm141_vm0, %v132_v12  ;;  %237 = vmatpush.msra.mxu2 %v216_v13  ;;  %v227_v24 = vld [vmem:[#allocation8 + $0xc0] sm:$0xff]  ;;  %v226_v26 = vld [vmem:[#allocation8 + $0xb8] sm:$0xff]  ;;  %v225_v28 = vld [vmem:[#allocation8 + $0xb0] sm:$0xff] }
  0x26   :  { %257 = vmatpush.msra.mxu3 %v232_v14  ;;  %v208_v29 = vld [vmem:[#allocation8 + $0x28] sm:$0xff]  ;;  %v207_v31 = vld [vmem:[#allocation8 + $0x20] sm:$0xff]  ;;  %v206_v33 = vld [vmem:[#allocation8 + $0x18] sm:$0xff] }
  0x27   :  { %238 = vmatpush.msra.mxu2 %v215_v15  ;;  %v224_v30 = vld [vmem:[#allocation8 + $0xa8] sm:$0xff]  ;;  %v223_v32 = vld [vmem:[#allocation8 + $0xa0] sm:$0xff]  ;;  %v222_v34 = vld [vmem:[#allocation8 + $0x98] sm:$0xff] }
  0x28   :  { %258 = vmatpush.msra.mxu3 %v231_v16  ;;  %v205_v35 = vld [vmem:[#allocation8 + $0x10] sm:$0xff]  ;;  %v204_v37 = vld [vmem:[#allocation8 + $0x8] sm:$0xff]  ;;  %v203_v39 = vld [vmem:[#allocation8] sm:$0xff] }
  0x29   :  { %239 = vmatpush.msra.mxu2 %v214_v17  ;;  %v221_v36 = vld [vmem:[#allocation8 + $0x90] sm:$0xff]  ;;  %v220_v38 = vld [vmem:[#allocation8 + $0x88] sm:$0xff]  ;;  %v219_v40 = vld [vmem:[#allocation8 + $0x80] sm:$0xff] }
  0x2a   :  { %259 = vmatpush.msra.mxu3 %v230_v18  ;;  %v301_v41 = vld [vmem:[#allocation10 + $0x78] sm:$0xff]  ;;  %v300_v42 = vld [vmem:[#allocation10 + $0x70] sm:$0xff]  ;;  %v299_v43 = vld [vmem:[#allocation10 + $0x68] sm:$0xff] }
  0x2b   :  { %240 = vmatpush.msra.mxu2 %v213_v19  ;;  %302 = vmatpush.msrb.mxu0 %v301_v41  ;;  %v298_v44 = vld [vmem:[#allocation10 + $0x60] sm:$0xff]  ;;  %v297_v45 = vld [vmem:[#allocation10 + $0x58] sm:$0xff]  ;;  %v296_v46 = vld [vmem:[#allocation10 + $0x50] sm:$0xff] }
  0x2c   :  { %260 = vmatpush.msra.mxu3 %v229_v20  ;;  %v295_v47 = vld [vmem:[#allocation10 + $0x48] sm:$0xff]  ;;  %v294_v48 = vld [vmem:[#allocation10 + $0x40] sm:$0xff]  ;;  %v293_v49 = vld [vmem:[#allocation10 + $0x38] sm:$0xff] }
  0x2d   :  { %241 = vmatpush.msra.mxu2 %v212_v21  ;;  %303 = vmatpush.msrb.mxu0 %v300_v42  ;;  %v292_v50 = vld [vmem:[#allocation10 + $0x30] sm:$0xff]  ;;  %v291_v51 = vld [vmem:[#allocation10 + $0x28] sm:$0xff]  ;;  %v185_v52 = vld [vmem:[#allocation7] sm:$0x3] }
  0x2e   :  { %261 = vmatpush.msra.mxu3 %v228_v22  ;;  %v193_v53 = vld [vmem:[%s708_s3] sm:$0x3]  ;;  %v187_v54 = vperm.slane %v185_v52, 0  ;;  %v188_v55 = vperm.slane %v185_v52, 1  ;;  %v290_v2 = vld [vmem:[#allocation10 + $0x20] sm:$0xff]  ;;  %v289_v3 = vld [vmem:[#allocation10 + $0x18] sm:$0xff] }
  0x2f   :  { %242 = vmatpush.msra.mxu2 %v211_v23  ;;  %304 = vmatpush.msrb.mxu0 %v299_v43  ;;  %v195_v56 = vperm.slane %v193_v53, 0  ;;  %v196_v57 = vperm.slane %v193_v53, 1  ;;  %v288_v4 = vld [vmem:[#allocation10 + $0x10] sm:$0xff]  ;;  %v287_v5 = vld [vmem:[#allocation10 + $0x8] sm:$0xff]  ;;  %v286_v6 = vld [vmem:[#allocation10] sm:$0xff] }
  0x30   :  { %262 = vmatpush.msra.mxu3 %v227_v24  ;;  %v348_v7 = vld [vmem:[#allocation11 + $0x78] sm:$0xff]  ;;  %v347_v8 = vld [vmem:[#allocation11 + $0x70] sm:$0xff]  ;;  %v346_v9 = vld [vmem:[#allocation11 + $0x68] sm:$0xff] }
  0x31   :  { %243 = vmatpush.msra.mxu2 %v210_v25  ;;  %305 = vmatpush.msrb.mxu0 %v298_v44  ;;  %v345_v10 = vld [vmem:[#allocation11 + $0x60] sm:$0xff]  ;;  %v344_v11 = vld [vmem:[#allocation11 + $0x58] sm:$0xff]  ;;  %v343_v12 = vld [vmem:[#allocation11 + $0x50] sm:$0xff] }
  0x32   :  { %263 = vmatpush.msra.mxu3 %v226_v26  ;;  %353 = vmatpush.msrb.mxu1 %v348_v7  ;;  %v342_v13 = vld [vmem:[#allocation11 + $0x48] sm:$0xff]  ;;  %v341_v14 = vld [vmem:[#allocation11 + $0x40] sm:$0xff]  ;;  %v340_v15 = vld [vmem:[#allocation11 + $0x38] sm:$0xff] }
  0x33   :  { %244 = vmatpush.msra.mxu2 %v209_v27  ;;  %306 = vmatpush.msrb.mxu0 %v297_v45  ;;  %v339_v16 = vld [vmem:[#allocation11 + $0x30] sm:$0xff]  ;;  %v338_v17 = vld [vmem:[#allocation11 + $0x28] sm:$0xff]  ;;  %v337_v18 = vld [vmem:[#allocation11 + $0x20] sm:$0xff] }
  0x34   :  { %264 = vmatpush.msra.mxu3 %v225_v28  ;;  %354 = vmatpush.msrb.mxu1 %v347_v8  ;;  %v407_v19 = vld [vmem:[%s710_s5] ss:$0 sm:$0xff]  ;;  %v336_v27 = vld [vmem:[#allocation11 + $0x18] sm:$0xff] }
  0x35   :  { %245 = vmatpush.msra.mxu2 %v208_v29  ;;  %307 = vmatpush.msrb.mxu0 %v296_v46  ;;  %v408_v23 = vld [vmem:[%s711_s6] ss:$0 sm:$0xff]  ;;  %v334_v29 = vld [vmem:[#allocation11 + $0x8] sm:$0xff] }
  0x36   :  { %265 = vmatpush.msra.mxu3 %v224_v30  ;;  %355 = vmatpush.msrb.mxu1 %v346_v9  ;;  %v335_v28 = vld [vmem:[#allocation11 + $0x10] sm:$0xff]  ;;  %v333_v30 = vld [vmem:[#allocation11] sm:$0xff] }
  0x37   :  { %246 = vmatpush.msra.mxu2 %v207_v31  ;;  %308 = vmatpush.msrb.mxu0 %v295_v47  ;;  %v409_v31 = vld [vmem:[%s713_s8] ss:$0 sm:$0xff] }
  0x38   :  { %266 = vmatpush.msra.mxu3 %v223_v32  ;;  %356 = vmatpush.msrb.mxu1 %v345_v10  ;;  %v410_v32 = vld [vmem:[%s714_s9] ss:$0 sm:$0xff] }
  0x39   :  { %247 = vmatpush.msra.mxu2 %v206_v33  ;;  %309 = vmatpush.msrb.mxu0 %v294_v48 }
  0x3a   :  { %267 = vmatpush.msra.mxu3 %v222_v34  ;;  %357 = vmatpush.msrb.mxu1 %v344_v11 }
  0x3b   :  { %248 = vmatpush.msra.mxu2 %v205_v35  ;;  %310 = vmatpush.msrb.mxu0 %v293_v49 }
  0x3c   :  { %268 = vmatpush.msra.mxu3 %v221_v36  ;;  %358 = vmatpush.msrb.mxu1 %v343_v12 }
  0x3d   :  { %249 = vmatpush.msra.mxu2 %v204_v37  ;;  %311 = vmatpush.msrb.mxu0 %v292_v50  ;;  %v411_v37 = vld [vmem:[%s716_s11] ss:$0 sm:$0xff] }
  0x3e   :  { %269 = vmatpush.msra.mxu3 %v220_v38  ;;  %359 = vmatpush.msrb.mxu1 %v342_v13 }
  0x3f   :  { %250 = vmatpush.msra.mxu2 %v203_v39  ;;  %312 = vmatpush.msrb.mxu0 %v291_v51 }
  0x40   :  { %270 = vmatpush.msra.mxu3 %v219_v40  ;;  %360 = vmatpush.msrb.mxu1 %v341_v14 }
  0x41   :  { %313 = vmatpush.msrb.mxu0 %v290_v2 }
  0x42   :  { %361 = vmatpush.msrb.mxu1 %v340_v15 }
  0x43   :  { %314 = vmatpush.msrb.mxu0 %v289_v3 }
  0x44   :  { %362 = vmatpush.msrb.mxu1 %v339_v16 }
  0x45   :  { %315 = vmatpush.msrb.mxu0 %v288_v4 }
  0x46   :  { %363 = vmatpush.msrb.mxu1 %v338_v17 }
  0x47   :  { %316 = vmatpush.msrb.mxu0 %v287_v5 }
  0x48   :  { %364 = vmatpush.msrb.mxu1 %v337_v18 }
  0x49   :  { %317 = vmatpush.msrb.mxu0 %v286_v6 }
  0x4a   :  { %365 = vmatpush.msrb.mxu1 %v336_v27 }
  0x4c   :  { %366 = vmatpush.msrb.mxu1 %v335_v28 }
  0x4e   :  { %367 = vmatpush.msrb.mxu1 %v334_v29 }
  0x50   :  { %368 = vmatpush.msrb.mxu1 %v333_v30 }
  0xa1   :  { %v162_v58 = vpop.f32.mrf.mxu0 }
  0xa2   :  { %v182_v59 = vpop.f32.mrf.mxu1  ;;  %v191_v60 = vmul.f32 %v187_v54, %v162_v58 }
  0xa3   :  { %v192_v61 = vmul.f32 %v188_v55, %v182_v59 }
  0xa4   :  { %v199_v62 = vadd.f32 %v195_v56, %v191_v60 }
  0xa5   :  { %v200_v63 = vadd.f32 %v196_v57, %v192_v61 }
  0xa6   :  { %v201_v0 = vmax.f32 %v199_v62, 0.0 }
  0xa7   :  { %v202_v1 = vmax.f32 %v200_v63, 0.0 }
  0xa8   :  { %251 = vmatmul.f32.vlgmr.msra.gmra.mxu2 %v201_v0 }
  0xa9   :  { %271 = vmatmul.f32.vlgmr.msra.gmra.mxu3 %v202_v1 }
 0x12b   :  { %v252_v20 = vpop.f32.mrf.mxu2 }
 0x12c   :  { %v272_v21 = vpop.f32.mrf.mxu3 }
 0x12d   :  { %v273_v22 = vadd.f32 %v272_v21, %v252_v20 }
 0x12f   :  { %v279_v24 = vmul.f32 %v407_v19, %v273_v22 }
 0x131   :  { %v284_v25 = vadd.f32 %v408_v23, %v279_v24 }
 0x133   :  { %v285_v26 = vmax.f32 %v284_v25, 0.0 }
 0x135   :  { %318 = vmatmul.f32.vlgmr.msrb.gmra.mxu0 %v285_v26 }
 0x1b2   :  { %v319_v33 = vpop.f32.mrf.mxu0 }
 0x1b3   :  { %v326_v34 = vmul.f32 %v409_v31, %v319_v33 }
 0x1b5   :  { %v331_v35 = vadd.f32 %v410_v32, %v326_v34 }
 0x1b7   :  { %v332_v36 = vmax.f32 %v331_v35, 0.0 }
 0x1b9   :  { %369 = vmatmul.f32.vlgmr.msrb.gmra.mxu1 %v332_v36 }
 0x236   :  { %v370_v38 = vpop.f32.mrf.mxu1 }
 0x237   :  { %v371_v39 = vadd.f32 %v411_v37, %v370_v38 }
 0x239   :  { %373 = vst [vmem:[#allocation13] sm:$0xff] %v371_v39 }
 0x23a   :  { %384 = dma.vmem_to_hbm [thread:$0]  %s380_s4, 128, %s382_s24, [#allocation4]  }
 0x23b   :  { %588 = dma.done.wait [#allocation4], 128  }
 0x23c   :  { %589 = vsyncadd [#allocation4], 4294967168 }
 0x23d   :  { %389 = vsyncpa [#allocation3], 1 }
 0x23e   :  { %390 = vsyncpa [#allocation6], 1 }
 0x23f   :  { %391 = vsyncpa [#allocation9], 1 }
 0x240   :  { %392 = vsyncpa [#allocation12], 1 }
 0x241   :  { %393 = vsyncpa [#allocation4], 1 }

</bundles_post_ra>
